<compile_context>
chip_gen: v7x
topology: tpu7x:2x2x1
jax: 0.10.0
libtpu: 0.0.40
codegen_flags: <defaults>
</compile_context>

<pallas_src>
import functools
import math

import numpy as np

import jax
import jax.numpy as jnp
from jax.experimental import pallas as pl
from jax.experimental.pallas import tpu as pltpu


# ----------------------------------------------------------------------------
# Host-side weight construction (PyTorch bilinear, align_corners=False).
# ----------------------------------------------------------------------------
def _interp_matrix(in_size: int, scale: int) -> np.ndarray:
    """W (in_size*scale, in_size) such that out = W @ x along that axis."""
    out_size = in_size * scale
    o = np.arange(out_size, dtype=np.float64)
    src = (o + 0.5) / scale - 0.5
    src = np.maximum(src, 0.0)                      # PyTorch clamps negatives
    i0 = np.minimum(np.floor(src).astype(np.int64), in_size - 1)
    i1 = np.minimum(i0 + 1, in_size - 1)
    w1 = src - i0
    w0 = 1.0 - w1
    m = np.zeros((out_size, in_size), dtype=np.float64)
    m[np.arange(out_size), i0] += w0
    m[np.arange(out_size), i1] += w1                # i0==i1 at edges -> weight 1
    return m.astype(np.float32)


def _pick_cblk(c: int, cap: int) -> int:
    """Largest divisor of c that is a multiple of 8 and <= cap; else c if it
    fits; else the largest divisor <= cap.  Keeps channel blocks 8-aligned
    (sublane tiling) whenever possible."""
    cap = max(1, int(cap))
    best_aligned = 0
    for d in range(1, min(c, cap) + 1):
        if c % d == 0 and d % 8 == 0:
            best_aligned = d
    if best_aligned:
        return best_aligned
    if c <= cap:
        return c
    for d in range(cap, 0, -1):
        if c % d == 0:
            return d
    return 1


# ----------------------------------------------------------------------------
# Kernels
# ----------------------------------------------------------------------------
def _upsample_kron_kernel(x_ref, kt_ref, o_ref):
    """x_ref: (1, Cblk, H*W), kt_ref: (H*W, H2*W2), o_ref: (1, Cblk, H2*W2).
    Single lane-dense MXU matmul per grid step."""
    o_ref[0] = jnp.dot(x_ref[0], kt_ref[...],
                       preferred_element_type=jnp.float32).astype(o_ref.dtype)


def _upsample_separable_kernel(x_ref, wwt_ref, whbd_ref, o_ref):
    """x_ref: (1, Cblk*H, W), wwt_ref: (W, W2), whbd_ref: (Cblk*H2, Cblk*H)
    (= kron(I_Cblk, Wh)), o_ref: (1, Cblk*H2, W2).  Two plain 2-D matmuls,
    no in-kernel transpose / reshape."""
    t = jnp.dot(x_ref[0], wwt_ref[...], preferred_element_type=jnp.float32)
    up = jnp.dot(whbd_ref[...], t.astype(whbd_ref.dtype),
                 preferred_element_type=jnp.float32)
    o_ref[0] = up.astype(o_ref.dtype)


def _concat_copy_kernel(aliased_ref, x2_ref, o_ref):
    """Copy a lane-dense channel block of x_2 into the (aliased) output."""
    del aliased_ref            # present only for the input/output alias
    o_ref[...] = x2_ref[...]


# ----------------------------------------------------------------------------
# Wrapper
# ----------------------------------------------------------------------------
def upsample_and_concat(x1, x2, scale_factor: int = 2):
    sf = int(scale_factor)
    n, c1, h, w = x1.shape
    n2, c2, h2, w2 = x2.shape
    if not (n == n2 and h2 == h * sf and w2 == w * sf):
        raise ValueError("x_2 spatial/batch shape incompatible with x_1")
    if x1.dtype != x2.dtype:
        raise ValueError("x_1 / x_2 dtypes must match")
    if c1 < 1 or c2 < 1:
        raise ValueError("need at least one channel in each input")

    dtype = x1.dtype
    s1, s2 = h * w, h2 * w2
    ctot = c1 + c2
    itemsize = jnp.dtype(dtype).itemsize
    # bf16 inputs -> bf16 weights (MXU bf16 path); otherwise keep f32.
    w_dtype = jnp.bfloat16 if dtype == jnp.bfloat16 else jnp.float32

    wh = _interp_matrix(h, sf)                       # (h2, h)
    ww = _interp_matrix(w, sf)                       # (w2, w)

    # --- channel-block sizing against a conservative VMEM budget ------------
    budget = 12 * 1024 * 1024                        # for double-buffered blocks
    per_chan = 2 * (s1 + s2) * itemsize              # in + out, double buffered
    cap = max(1, min(512, budget // per_chan))

    use_kron = (s1 * s2 * 4) <= (2 * 1024 * 1024)    # kron weight <= 2 MiB
    if use_kron:
        cblk = _pick_cblk(c1, cap)
    else:
        # block-diagonal Wh grows as cblk**2 * h * h2
        cap_bd = max(1, math.isqrt(max(1, (2 * 1024 * 1024) // max(1, 4 * h * h2))))
        cblk = _pick_cblk(c1, min(cap, cap_bd))

    cblk2 = _pick_cblk(math.gcd(c1, c2),
                       max(1, min(512, budget // max(1, 4 * s2 * itemsize))))

    # In-place concat into one shared buffer needs 8-aligned channel blocks.
    fused = (cblk % 8 == 0) and (cblk2 % 8 == 0)
    c_out = ctot if fused else c1

    params = pltpu.CompilerParams(
        dimension_semantics=("parallel", "parallel"),
        vmem_limit_bytes=48 * 1024 * 1024,
    )

    # --- upsample half -------------------------------------------------------
    if use_kron:
        kt = jnp.asarray(np.kron(wh, ww).T, dtype=w_dtype)       # (s1, s2)
        x1v = x1.reshape(n, c1, s1)
        buf_flat = pl.pallas_call(
            _upsample_kron_kernel,
            out_shape=jax.ShapeDtypeStruct((n, c_out, s2), dtype),
            grid=(n, c1 // cblk),
            in_specs=[
                pl.BlockSpec((1, cblk, s1), lambda i, c: (i, c, 0)),
                pl.BlockSpec((s1, s2), lambda i, c: (0, 0)),
            ],
            out_specs=pl.BlockSpec((1, cblk, s2), lambda i, c: (i, c, 0)),
            compiler_params=params,
        )(x1v, kt)
    else:
        wwt = jnp.asarray(ww.T, dtype=w_dtype)                   # (w, w2)
        whbd = jnp.asarray(np.kron(np.eye(cblk, dtype=np.float32), wh),
                           dtype=w_dtype)                        # (cblk*h2, cblk*h)
        x1v = x1.reshape(n, c1 * h, w)
        buf_rows = pl.pallas_call(
            _upsample_separable_kernel,
            out_shape=jax.ShapeDtypeStruct((n, c_out * h2, w2), dtype),
            grid=(n, c1 // cblk),
            in_specs=[
                pl.BlockSpec((1, cblk * h, w), lambda i, c: (i, c, 0)),
                pl.BlockSpec((w, w2), lambda i, c: (0, 0)),
                pl.BlockSpec((cblk * h2, cblk * h), lambda i, c: (0, 0)),
            ],
            out_specs=pl.BlockSpec((1, cblk * h2, w2), lambda i, c: (i, c, 0)),
            compiler_params=params,
        )(x1v, wwt, whbd)
        buf_flat = buf_rows.reshape(n, c_out, s2)

    # --- concat half ---------------------------------------------------------
    x2v = x2.reshape(n, c2, s2)
    if fused:
        # Copy x_2 into channels [c1:ctot) of the SAME buffer (aliased in place).
        off = c1 // cblk2
        out_flat = pl.pallas_call(
            _concat_copy_kernel,
            out_shape=jax.ShapeDtypeStruct((n, ctot, s2), dtype),
            grid=(n, c2 // cblk2),
            in_specs=[
                pl.BlockSpec(memory_space=pl.ANY),               # aliased, untouched
                pl.BlockSpec((1, cblk2, s2), lambda i, c: (i, c, 0)),
            ],
            out_specs=pl.BlockSpec((1, cblk2, s2), lambda i, c: (i, c + off, 0)),
            input_output_aliases={0: 0},
            compiler_params=params,
        )(buf_flat, x2v)
        return out_flat.reshape(n, ctot, h2, w2)
    else:
        # Misaligned channel counts: fall back to an XLA concat for the copy half.
        up = buf_flat.reshape(n, c1, h2, w2)
        return jnp.concatenate([up, x2], axis=1)


# ----------------------------------------------------------------------------
# Self-check
# ----------------------------------------------------------------------------
def _reference(x1, x2, sf):
    wh = jnp.asarray(_interp_matrix(x1.shape[2], sf))
    ww = jnp.asarray(_interp_matrix(x1.shape[3], sf))
    up = jnp.einsum("oh,nchw,pw->ncop", wh, x1, ww)
    return jnp.concatenate([up, x2], axis=1)


if __name__ == "__main__":
    key = jax.random.PRNGKey(0)
    k1, k2, k3, k4 = jax.random.split(key, 4)
    SF = 2
    fn = jax.jit(functools.partial(upsample_and_concat, scale_factor=SF))

    # Case 1: small spatial -> single-matmul (kron) lane-dense path + fused
    # in-place concat.
    N, C1, H, W = 2, 8, 16, 16
    C2, H2, W2 = 8, H * SF, W * SF
    x_1 = jax.random.normal(k1, (N, C1, H, W), dtype=jnp.float32)
    x_2 = jax.random.normal(k2, (N, C2, H2, W2), dtype=jnp.float32)
    out = jax.block_until_ready(fn(x_1, x_2))
    ref = _reference(x_1, x_2, SF)
    assert out.shape == (N, C1 + C2, H2, W2)
    assert jnp.allclose(out, ref, atol=1e-4, rtol=1e-4), "case 1 mismatch"

    # Case 2: larger spatial -> separable two-matmul path (W2 >= 128 lanes).
    N, C1, H, W = 1, 8, 64, 64
    C2, H2, W2 = 8, H * SF, W * SF
    y_1 = jax.random.normal(k3, (N, C1, H, W), dtype=jnp.float32)
    y_2 = jax.random.normal(k4, (N, C2, H2, W2), dtype=jnp.float32)
    out2 = jax.block_until_ready(fn(y_1, y_2))
    ref2 = _reference(y_1, y_2, SF)
    assert out2.shape == (N, C1 + C2, H2, W2)
    assert jnp.allclose(out2, ref2, atol=1e-4, rtol=1e-4), "case 2 mismatch"

    print("KERNEL_OK")
</pallas_src>

<mosaic_0001>
module attributes {stable_mosaic.version = 11 : i64} {
  func.func @_concat_copy_kernel(%arg0: i32, %arg1: i32, %arg2: memref<2x16x1024xf32, #tpu.memory_space<any>>, %arg3: memref<1x8x1024xf32, #tpu.memory_space<vmem>>, %arg4: memref<1x8x1024xf32, #tpu.memory_space<vmem>>) attributes {dimension_semantics = [#tpu.dimension_semantics<parallel>, #tpu.dimension_semantics<parallel>], iteration_bounds = array<i64: 2, 1>, scalar_prefetch = 0 : i64, scratch_operands = 0 : i64, tpu.core_type = #tpu.core_type<tc>, window_params = [{}, {transform_indices = @transform_1, window_bounds = array<i64: 1, 8, 1024>}, {transform_indices = @transform_2, window_bounds = array<i64: 1, 8, 1024>}]} {
    %c0 = arith.constant 0 : index
    %c0_0 = arith.constant 0 : index
    %c0_1 = arith.constant 0 : index
    %0 = vector.load %arg3[%c0, %c0_0, %c0_1] : memref<1x8x1024xf32, #tpu.memory_space<vmem>>, vector<1x8x1024xf32>
    %c0_2 = arith.constant 0 : index
    %c0_3 = arith.constant 0 : index
    %c0_4 = arith.constant 0 : index
    %1 = vector.load %arg4[%c0_2, %c0_3, %c0_4] : memref<1x8x1024xf32, #tpu.memory_space<vmem>>, vector<1x8x1024xf32>
    tpu.vector_store %arg4[%c0_2, %c0_3, %c0_4], %0 {strides = array<i32>} : memref<1x8x1024xf32, #tpu.memory_space<vmem>>, vector<1x8x1024xf32>,
    return
  }
  func.func @transform_1(%arg0: i32, %arg1: i32) -> (i32, i32, i32) {
    %c0_i32 = arith.constant 0 : i32
    %c0_i32_0 = arith.constant 0 : i32
    return %arg0, %arg1, %c0_i32 : i32, i32, i32
  }
  func.func @transform_2(%arg0: i32, %arg1: i32) -> (i32, i32, i32) {
    %c1_i32 = arith.constant 1 : i32
    %0 = arith.addi %arg1, %c1_i32 : i32
    %c0_i32 = arith.constant 0 : i32
    %c0_i32_0 = arith.constant 0 : i32
    return %arg0, %0, %c0_i32 : i32, i32, i32
  }
}

module attributes {stable_mosaic.version = 11 : i64} {
  func.func @_upsample_kron_kernel(%arg0: i32, %arg1: i32, %arg2: memref<1x8x256xf32, #tpu.memory_space<vmem>>, %arg3: memref<256x1024xf32, #tpu.memory_space<vmem>>, %arg4: memref<1x8x1024xf32, #tpu.memory_space<vmem>>) attributes {dimension_semantics = [#tpu.dimension_semantics<parallel>, #tpu.dimension_semantics<parallel>], iteration_bounds = array<i64: 2, 1>, scalar_prefetch = 0 : i64, scratch_operands = 0 : i64, tpu.core_type = #tpu.core_type<tc>, window_params = [{transform_indices = @transform_0, window_bounds = array<i64: 1, 8, 256>}, {pipeline_mode = #tpu.pipeline_mode<synchronous>, transform_indices = @transform_1, window_bounds = array<i64: 256, 1024>}, {transform_indices = @transform_2, window_bounds = array<i64: 1, 8, 1024>}]} {
    %c0 = arith.constant 0 : index
    %c0_0 = arith.constant 0 : index
    %c0_1 = arith.constant 0 : index
    %0 = vector.load %arg2[%c0, %c0_0, %c0_1] : memref<1x8x256xf32, #tpu.memory_space<vmem>>, vector<1x8x256xf32>
    %1 = vector.shape_cast %0 : vector<1x8x256xf32> to vector<8x256xf32>
    %c0_2 = arith.constant 0 : index
    %c0_3 = arith.constant 0 : index
    %2 = vector.load %arg3[%c0_2, %c0_3] : memref<256x1024xf32, #tpu.memory_space<vmem>>, vector<256x1024xf32>
    %cst = arith.constant dense<0.000000e+00> : vector<8x1024xf32>
    %3 = tpu.matmul %1, %2, %cst {dimension_numbers = #tpu.dot_dimension_numbers<[1], [0], [0], [1], [0, 0, 1, 1], [], []>} : vector<8x256xf32>, vector<256x1024xf32>, vector<8x1024xf32> -> vector<8x1024xf32>
    %c0_4 = arith.constant 0 : index
    %c0_5 = arith.constant 0 : index
    %c0_6 = arith.constant 0 : index
    %4 = vector.load %arg4[%c0_4, %c0_5, %c0_6] : memref<1x8x1024xf32, #tpu.memory_space<vmem>>, vector<1x8x1024xf32>
    %5 = vector.shape_cast %4 : vector<1x8x1024xf32> to vector<8x1024xf32>
    %6 = vector.shape_cast %3 : vector<8x1024xf32> to vector<1x8x1024xf32>
    tpu.vector_store %arg4[%c0_4, %c0_5, %c0_6], %6 {strides = array<i32>} : memref<1x8x1024xf32, #tpu.memory_space<vmem>>, vector<1x8x1024xf32>,
    return
  }
  func.func @transform_0(%arg0: i32, %arg1: i32) -> (i32, i32, i32) {
    %c0_i32 = arith.constant 0 : i32
    %c0_i32_0 = arith.constant 0 : i32
    return %arg0, %arg1, %c0_i32 : i32, i32, i32
  }
  func.func @transform_1(%arg0: i32, %arg1: i32) -> (i32, i32) {
    %c0_i32 = arith.constant 0 : i32
    %c0_i32_0 = arith.constant 0 : i32
    %c0_i32_1 = arith.constant 0 : i32
    return %c0_i32, %c0_i32_0 : i32, i32
  }
  func.func @transform_2(%arg0: i32, %arg1: i32) -> (i32, i32, i32) {
    %c0_i32 = arith.constant 0 : i32
    %c0_i32_0 = arith.constant 0 : i32
    return %arg0, %arg1, %c0_i32 : i32, i32, i32
  }
}

</mosaic_0001>

<bundles_post_ra>
// kernel: upsample_and_concat.3
= control target key start
LH: loop header
LB: loop body
LE: loop exit
PB: predicated region body
PF: predicated region fallthrough
CT: control target
= control target key end

     0   :  { %s349_s9 = smov 0   ;;  %s351_s10 = smov 0   ;;  %s382_s0 = inlined_call_operand.vmem [shape: f32[2,16,1024], index: 0, kind: input, shape index: {}, may-alias: {0,2}]   ;;  %s383_s1 = inlined_call_operand.vmem [shape: f32[2,8,1024], index: 1, kind: input, shape index: {}]   ;;  %s384_s2 = inlined_call_operand.vmem [shape: f32[2,16,1024], index: 2, kind: output, shape index: {}, may-alias: {0,2}]  }
   0x1   :  { %s353_s11 = smov 0  }
   0x2 LB: > { %s24_s0 = sadd.s32 1, %s328_s10  ;;  %p275_p0 = scmp.ge.s32.totalorder %s332_s11, 1  ;;  %s332_s11 = sphi %s353_s11, %s12_s11   ;;  %s328_s10 = sphi %s351_s10, %s386_s10   ;;  %s324_s9 = sphi %s349_s9, %s385_s9  }
   0x3   : > { %p26_p1 = scmp.ge.s32.totalorder %s24_s0, 2  ;;  %p110_p2 = scmp.lt.s32.totalorder %s332_s11, 3 }
   0x5   : > { %s388_s0 = smov (%p26_p1, %s24_s0), 0  ;;  %p111_p3 = pnand %p275_p0, %p110_p2 }
   0x6   : > { %p139_p4 = scmp.lt.s32.totalorder (!%p111_p3), %s324_s9, 1 }
   0x7   : > { %114 = sbr.rel (%p111_p3) target bundleno = 22 (0x16), region = 24 }
   0xe   : > { %s390_s9 = smov (!%p139_p4, %s324_s9), 1 }
   0xf   : > { %s282_s12 = sshll.u32 %s390_s9, 6  ;;  %s285_s13 = sshll.u32 %s390_s9, 7 }
  0x10   : > { %s147_s16 = scalar_lea.vmem %s383_s1, %s282_s12  ;;  %s284_s17 = sadd.s32 64, %s285_s13 }
  0x11   : > { %s157_s20 = scalar_lea.vmem %s384_s2, %s284_s17  ;;  %v159_v0 = vld [vmem:[%s147_s16] sm:$0xff]  ;;  %v160_v1 = vld [vmem:[%s147_s16 + $0x8] sm:$0xff]  ;;  %v161_v2 = vld [vmem:[%s147_s16 + $0x10] sm:$0xff] }
  0x12   : > { %167 = vst [vmem:[%s157_s20] sm:$0xff] %v159_v0  ;;  %168 = vst [vmem:[%s157_s20 + $0x8] sm:$0xff] %v160_v1  ;;  %v162_v3 = vld [vmem:[%s147_s16 + $0x18] sm:$0xff]  ;;  %v163_v4 = vld [vmem:[%s147_s16 + $0x20] sm:$0xff] }
  0x13   : > { %169 = vst [vmem:[%s157_s20 + $0x10] sm:$0xff] %v161_v2  ;;  %v164_v5 = vld [vmem:[%s147_s16 + $0x28] sm:$0xff]  ;;  %170 = vst [vmem:[%s157_s20 + $0x18] sm:$0xff] %v162_v3  ;;  %v165_v6 = vld [vmem:[%s147_s16 + $0x30] sm:$0xff] }
  0x14   : > { %171 = vst [vmem:[%s157_s20 + $0x20] sm:$0xff] %v163_v4  ;;  %172 = vst [vmem:[%s157_s20 + $0x28] sm:$0xff] %v164_v5  ;;  %v166_v7 = vld [vmem:[%s147_s16 + $0x38] sm:$0xff] }
  0x15   : > { %173 = vst [vmem:[%s157_s20 + $0x30] sm:$0xff] %v165_v6  ;;  %174 = vst [vmem:[%s157_s20 + $0x38] sm:$0xff] %v166_v7 }
  0x16 PF: > { %s12_s11 = sadd.s32 1, %s332_s11   ;;  %s385_s9 = smov %s328_s10 }
  0x17   : > { %p9_p5 = scmp.ge.s32.totalorder %s12_s11, 4   ;;  %s386_s10 = smov %s388_s0 }
  0x19   :  { %11 = sbr.rel (!%p9_p5) target bundleno = 2 (0x2), region = 54 }

// kernel: upsample_and_concat.2
= control target key start
LH: loop header
LB: loop body
LE: loop exit
PB: predicated region body
PF: predicated region fallthrough
CT: control target
= control target key end

     0   :  { %7 = vsyncpa [#allocation3], 0  ;;  %s1232_s9 = smov 0   ;;  %s1234_s10 = smov 0   ;;  %s1330_s0 = inlined_call_operand.vmem [shape: f32[2,8,256], index: 0, kind: input, shape index: {}]   ;;  %s1331_s1 = inlined_call_operand.hbm [shape: f32[256,1024], index: 1, kind: input, shape index: {}]   ;;  %s1332_s2 = inlined_call_operand.vmem [shape: f32[2,16,1024], index: 2, kind: output, shape index: {}]  }
   0x1   :  { %s1236_s11 = smov 0  }
   0x2 LB: > { %s850_s12 = sadd.s32 4294967295, %s1212_s11   ;;  %s25_s13 = sadd.s32 1, %s1208_s10  ;;  %s1212_s11 = sphi %s1236_s11, %s13_s11   ;;  %s1208_s10 = sphi %s1234_s10, %s1342_s10   ;;  %s1204_s9 = sphi %s1232_s9, %s1341_s9  }
   0x3   : > { %p27_p0 = scmp.ge.s32.totalorder %s25_s13, 2  ;;  %p852_p1 = scmp.ge.s32.totalorder %s1212_s11, 1 }
   0x4   : > { %p107_p2 = scmp.lt.s32.totalorder %s1212_s11, 3  ;;  %p1257_p4 = scmp.eq.s32.totalorder %s850_s12, 0 }
   0x5   : > { %s1344_s13 = smov (%p27_p0, %s25_s13), 0  ;;  %s1214_s16 = smov [#allocation2]  }
   0x6   : > { %p1253_p3 = pnand %p852_p1, %p107_p2  ;;  %s119_s17 = sshll.u32 %s1214_s16, 4  ;;  %s120_s17 = int_to_ptr.vmem [resolvable:$true] %s119_s17 }
   0x7   : > { %s1337_s15 = scalar_select %p1257_p4, 1, 0 }
   0x8   : > { %s1336_s14 = scalar_select %p1253_p3, 1, 0 }
   0x9   : > { %p1125_p5 = pneg %p1253_p3  ;;  %s1158_s21 = scalar_lea.hbm %s1331_s1, 32768 }
   0xa   : > { %p1159_p7 = scmp.ne.s32.totalorder %s1331_s1, %s1158_s21  ;;  %p1165_p11 = scmp.lt.u32.totalorder %s1158_s21, %s1331_s1 }
   0xb   : > { %p1265_p6 = pnand %p1257_p4, %p1125_p5 }
   0xd   : > { %p1160_p8 = pneg %p1265_p6 }
   0xf   : > { %p1161_p9 = pnand %p1160_p8, %p1159_p7 }
  0x11   : > { %p1162_p10 = pneg %p1161_p9 }
  0x13   : > { %p1167_p12 = pnand %p1165_p11, %p1162_p10 }
  0x15   : > { %1170 = shalt.err (!%p1167_p12)
}
  0x16   : > { %s1171_s26 = scalar_lea.vmem %s120_s17, 32768  ;;  %p1179_p2 = scmp.lt.s32.totalorder %s120_s17, %s120_s17 }
  0x17   : > { %p1172_p13 = scmp.ne.s32.totalorder %s120_s17, %s1171_s26  ;;  %p1180_p5 = scmp.lt.s32.totalorder %s1171_s26, %s1171_s26 }
  0x19   : > { %p1174_p0 = pnand %p1172_p13, %p1160_p8  ;;  %p1181_p4 = por %p1180_p5, %p1179_p2 }
  0x1b   : > { %p1175_p1 = pneg %p1174_p0 }
  0x1d   : > { %p1182_p3 = pnand %p1181_p4, %p1175_p1 }
  0x1f   : > { %1185 = shalt.err (!%p1182_p3)
}
  0x20   : > { %s1215_s27 = smov 1024   ;;  %s1216_s28 = smov 64  }
  0x21   : > { %1128 = dma.hbm_to_vmem [thread:$0]  (!%p1265_p6), %s1331_s1, 32768, %s120_s17, [#allocation3], %s1215_s27, %s1215_s27, %s1216_s28  }
  0x22   : > { %p1339_p7 = scmp.ne.s32.totalorder %s1336_s14, 0 }
  0x23   : > { %p1340_p9 = scmp.ne.s32.totalorder (!%p1339_p7), %s1337_s15, 0 }
  0x24   : > { %147 = sbr.rel (%p1339_p7) target bundleno = 391 (0x187), region = 28 }
  0x2b   : > { %1199 = dma.done.wait (%p1340_p9), [#allocation3], 32768  }
  0x2c   : > { %1201 = vsyncadd (%p1340_p9), [#allocation3], 4294934528  ;;  %v198_v0 = vld [vmem:[#allocation2 + $0x8] sm:$0xff]  ;;  %v200_v2 = vld [vmem:[#allocation2 + $0x18] sm:$0xff]  ;;  %p177_p3 = scmp.lt.s32.totalorder %s1204_s9, 1 }
  0x2d   : > { %v206_v1 = vld [vmem:[#allocation2 + $0x48] sm:$0xff]  ;;  %v208_v4 = vld [vmem:[#allocation2 + $0x58] sm:$0xff]  ;;  %v197_v5 = vld [vmem:[#allocation2] sm:$0xff] }
  0x2e   : > { %v865_v3 = vpack.c.bf16 %v206_v1, %v198_v0  ;;  %v205_v6 = vld [vmem:[#allocation2 + $0x40] sm:$0xff]  ;;  %v929_v7 = vpack.c.bf16 %v208_v4, %v200_v2  ;;  %v199_v9 = vld [vmem:[#allocation2 + $0x10] sm:$0xff]  ;;  %v214_v11 = vld [vmem:[#allocation2 + $0x88] sm:$0xff]  ;;  %s1346_s9 = smov (!%p177_p3, %s1204_s9), 1 }
  0x2f   : > { %v867_v8 = vpack.c.bf16 %v205_v6, %v197_v5  ;;  %v207_v10 = vld [vmem:[#allocation2 + $0x50] sm:$0xff]  ;;  %v222_v13 = vld [vmem:[#allocation2 + $0xc8] sm:$0xff]  ;;  %v216_v14 = vld [vmem:[#allocation2 + $0x98] sm:$0xff]  ;;  %s863_s3 = sshll.u32 %s1346_s9, 4  ;;  %s864_s7 = sshll.u32 %s1346_s9, 7 }
  0x30   : > { %866 = vmatprep.subr.bf16.mxu0 %v865_v3  ;;  %v931_v12 = vpack.c.bf16 %v207_v10, %v199_v9  ;;  %v224_v15 = vld [vmem:[#allocation2 + $0xd8] sm:$0xff]  ;;  %930 = vmatprep.subr.bf16.mxu1 %v929_v7  ;;  %v869_v16 = vpack.c.bf16 %v222_v13, %v214_v11  ;;  %v213_v18 = vld [vmem:[#allocation2 + $0x80] sm:$0xff]  ;;  %v215_v20 = vld [vmem:[#allocation2 + $0x90] sm:$0xff]  ;;  %s1301_s6 = scalar_lea.vmem %s1330_s0, %s863_s3  ;;  %s194_s14 = scalar_lea.vmem %s1332_s2, %s864_s7 }
  0x31   : > { %868 = vmatpush1.bf16.msra.mxu0 %v867_v8  ;;  %v933_v17 = vpack.c.bf16 %v224_v15, %v216_v14  ;;  %v221_v19 = vld [vmem:[#allocation2 + $0xc0] sm:$0xff]  ;;  %v223_v22 = vld [vmem:[#allocation2 + $0xd0] sm:$0xff]  ;;  %v230_v23 = vld [vmem:[#allocation2 + $0x108] sm:$0xff] }
  0x32   : > { %932 = vmatpush1.bf16.msra.mxu1 %v931_v12  ;;  %v871_v21 = vpack.c.bf16 %v221_v19, %v213_v18  ;;  %v238_v24 = vld [vmem:[#allocation2 + $0x148] sm:$0xff]  ;;  %870 = vmatprep.subr.bf16.mxu0 %v869_v16  ;;  %v935_v25 = vpack.c.bf16 %v223_v22, %v215_v20  ;;  %v232_v27 = vld [vmem:[#allocation2 + $0x118] sm:$0xff]  ;;  %v229_v29 = vld [vmem:[#allocation2 + $0x100] sm:$0xff] }
  0x33   : > { %934 = vmatprep.subr.bf16.mxu1 %v933_v17  ;;  %v873_v26 = vpack.c.bf16 %v238_v24, %v230_v23  ;;  %v240_v28 = vld [vmem:[#allocation2 + $0x158] sm:$0xff]  ;;  %v237_v31 = vld [vmem:[#allocation2 + $0x140] sm:$0xff]  ;;  %v231_v32 = vld [vmem:[#allocation2 + $0x110] sm:$0xff] }
  0x34   : > { %v937_v30 = vpack.c.bf16 %v240_v28, %v232_v27  ;;  %v239_v33 = vld [vmem:[#allocation2 + $0x150] sm:$0xff]  ;;  %v875_v34 = vpack.c.bf16 %v237_v31, %v229_v29  ;;  %v246_v35 = vld [vmem:[#allocation2 + $0x188] sm:$0xff]  ;;  %v248_v37 = vld [vmem:[#allocation2 + $0x198] sm:$0xff] }
  0x35   : > { %872 = vmatpush1.bf16.msra.mxu0 %v871_v21  ;;  %v254_v36 = vld [vmem:[#allocation2 + $0x1c8] sm:$0xff]  ;;  %v939_v38 = vpack.c.bf16 %v239_v33, %v231_v32  ;;  %v256_v40 = vld [vmem:[#allocation2 + $0x1d8] sm:$0xff]  ;;  %v245_v41 = vld [vmem:[#allocation2 + $0x180] sm:$0xff] }
  0x36   : > { %936 = vmatpush1.bf16.msra.mxu1 %v935_v25  ;;  %874 = vmatprep.subr.bf16.mxu0 %v873_v26  ;;  %v877_v39 = vpack.c.bf16 %v254_v36, %v246_v35  ;;  %v253_v42 = vld [vmem:[#allocation2 + $0x1c0] sm:$0xff]  ;;  %v941_v43 = vpack.c.bf16 %v256_v40, %v248_v37  ;;  %v247_v44 = vld [vmem:[#allocation2 + $0x190] sm:$0xff]  ;;  %v262_v46 = vld [vmem:[#allocation2 + $0x208] sm:$0xff] }
  0x37   : > { %938 = vmatprep.subr.bf16.mxu1 %v937_v30  ;;  %v255_v45 = vld [vmem:[#allocation2 + $0x1d0] sm:$0xff]  ;;  %v270_v47 = vld [vmem:[#allocation2 + $0x248] sm:$0xff]  ;;  %v264_v48 = vld [vmem:[#allocation2 + $0x218] sm:$0xff]  ;;  %v879_v50 = vpack.c.bf16 %v253_v42, %v245_v41 }
  0x38   : > { %v272_v49 = vld [vmem:[#allocation2 + $0x258] sm:$0xff]  ;;  %v943_v51 = vpack.c.bf16 %v255_v45, %v247_v44  ;;  %v881_v52 = vpack.c.bf16 %v270_v47, %v262_v46  ;;  %v261_v53 = vld [vmem:[#allocation2 + $0x200] sm:$0xff]  ;;  %v263_v55 = vld [vmem:[#allocation2 + $0x210] sm:$0xff] }
  0x39   : > { %876 = vmatpush1.bf16.msra.mxu0 %v875_v34  ;;  %v269_v54 = vld [vmem:[#allocation2 + $0x240] sm:$0xff]  ;;  %v945_v56 = vpack.c.bf16 %v272_v49, %v264_v48  ;;  %v271_v57 = vld [vmem:[#allocation2 + $0x250] sm:$0xff]  ;;  %v278_v58 = vld [vmem:[#allocation2 + $0x288] sm:$0xff] }
  0x3a   : > { %940 = vmatpush1.bf16.msra.mxu1 %v939_v38  ;;  %878 = vmatprep.subr.bf16.mxu0 %v877_v39  ;;  %v286_v59 = vld [vmem:[#allocation2 + $0x2c8] sm:$0xff]  ;;  %v280_v60 = vld [vmem:[#allocation2 + $0x298] sm:$0xff]  ;;  %v883_v62 = vpack.c.bf16 %v269_v54, %v261_v53  ;;  %v947_v63 = vpack.c.bf16 %v271_v57, %v263_v55  ;;  %v277_v1 = vld [vmem:[#allocation2 + $0x280] sm:$0xff] }
  0x3b   : > { %942 = vmatprep.subr.bf16.mxu1 %v941_v43  ;;  %v288_v61 = vld [vmem:[#allocation2 + $0x2d8] sm:$0xff]  ;;  %v885_v0 = vpack.c.bf16 %v286_v59, %v278_v58  ;;  %v285_v2 = vld [vmem:[#allocation2 + $0x2c0] sm:$0xff]  ;;  %v279_v3 = vld [vmem:[#allocation2 + $0x290] sm:$0xff] }
  0x3c   : > { %v949_v4 = vpack.c.bf16 %v288_v61, %v280_v60  ;;  %v287_v5 = vld [vmem:[#allocation2 + $0x2d0] sm:$0xff]  ;;  %v294_v6 = vld [vmem:[#allocation2 + $0x308] sm:$0xff]  ;;  %v296_v8 = vld [vmem:[#allocation2 + $0x318] sm:$0xff]  ;;  %v887_v10 = vpack.c.bf16 %v285_v2, %v277_v1 }
  0x3d   : > { %880 = vmatpush1.bf16.msra.mxu0 %v879_v50  ;;  %v302_v7 = vld [vmem:[#allocation2 + $0x348] sm:$0xff]  ;;  %v304_v9 = vld [vmem:[#allocation2 + $0x358] sm:$0xff]  ;;  %v951_v11 = vpack.c.bf16 %v287_v5, %v279_v3  ;;  %v293_v13 = vld [vmem:[#allocation2 + $0x300] sm:$0xff] }
  0x3e   : > { %944 = vmatpush1.bf16.msra.mxu1 %v943_v51  ;;  %882 = vmatprep.subr.bf16.mxu0 %v881_v52  ;;  %v889_v12 = vpack.c.bf16 %v302_v7, %v294_v6  ;;  %v301_v14 = vld [vmem:[#allocation2 + $0x340] sm:$0xff]  ;;  %v295_v15 = vld [vmem:[#allocation2 + $0x310] sm:$0xff]  ;;  %v953_v16 = vpack.c.bf16 %v304_v9, %v296_v8  ;;  %v310_v18 = vld [vmem:[#allocation2 + $0x388] sm:$0xff] }
  0x3f   : > { %946 = vmatprep.subr.bf16.mxu1 %v945_v56  ;;  %v303_v17 = vld [vmem:[#allocation2 + $0x350] sm:$0xff]  ;;  %v318_v19 = vld [vmem:[#allocation2 + $0x3c8] sm:$0xff]  ;;  %v312_v20 = vld [vmem:[#allocation2 + $0x398] sm:$0xff]  ;;  %v891_v22 = vpack.c.bf16 %v301_v14, %v293_v13 }
  0x40   : > { %v320_v21 = vld [vmem:[#allocation2 + $0x3d8] sm:$0xff]  ;;  %v955_v23 = vpack.c.bf16 %v303_v17, %v295_v15  ;;  %v893_v24 = vpack.c.bf16 %v318_v19, %v310_v18  ;;  %v309_v25 = vld [vmem:[#allocation2 + $0x380] sm:$0xff]  ;;  %v311_v27 = vld [vmem:[#allocation2 + $0x390] sm:$0xff] }
  0x41   : > { %884 = vmatpush1.bf16.msra.mxu0 %v883_v62  ;;  %v317_v26 = vld [vmem:[#allocation2 + $0x3c0] sm:$0xff]  ;;  %v957_v28 = vpack.c.bf16 %v320_v21, %v312_v20  ;;  %v319_v29 = vld [vmem:[#allocation2 + $0x3d0] sm:$0xff]  ;;  %v326_v30 = vld [vmem:[#allocation2 + $0x408] sm:$0xff] }
  0x42   : > { %948 = vmatpush1.bf16.msra.mxu1 %v947_v63  ;;  %886 = vmatprep.subr.bf16.mxu0 %v885_v0  ;;  %v334_v31 = vld [vmem:[#allocation2 + $0x448] sm:$0xff]  ;;  %v328_v32 = vld [vmem:[#allocation2 + $0x418] sm:$0xff]  ;;  %v895_v34 = vpack.c.bf16 %v317_v26, %v309_v25  ;;  %v959_v35 = vpack.c.bf16 %v319_v29, %v311_v27  ;;  %v325_v37 = vld [vmem:[#allocation2 + $0x400] sm:$0xff] }
  0x43   : > { %950 = vmatprep.subr.bf16.mxu1 %v949_v4  ;;  %v336_v33 = vld [vmem:[#allocation2 + $0x458] sm:$0xff]  ;;  %v897_v36 = vpack.c.bf16 %v334_v31, %v326_v30  ;;  %v333_v38 = vld [vmem:[#allocation2 + $0x440] sm:$0xff]  ;;  %v327_v39 = vld [vmem:[#allocation2 + $0x410] sm:$0xff] }
  0x44   : > { %v961_v40 = vpack.c.bf16 %v336_v33, %v328_v32  ;;  %v335_v41 = vld [vmem:[#allocation2 + $0x450] sm:$0xff]  ;;  %v342_v42 = vld [vmem:[#allocation2 + $0x488] sm:$0xff]  ;;  %v344_v44 = vld [vmem:[#allocation2 + $0x498] sm:$0xff]  ;;  %v899_v46 = vpack.c.bf16 %v333_v38, %v325_v37 }
  0x45   : > { %888 = vmatpush1.bf16.msra.mxu0 %v887_v10  ;;  %v350_v43 = vld [vmem:[#allocation2 + $0x4c8] sm:$0xff]  ;;  %v352_v45 = vld [vmem:[#allocation2 + $0x4d8] sm:$0xff]  ;;  %v963_v47 = vpack.c.bf16 %v335_v41, %v327_v39  ;;  %v341_v49 = vld [vmem:[#allocation2 + $0x480] sm:$0xff] }
  0x46   : > { %952 = vmatpush1.bf16.msra.mxu1 %v951_v11  ;;  %890 = vmatprep.subr.bf16.mxu0 %v889_v12  ;;  %v901_v48 = vpack.c.bf16 %v350_v43, %v342_v42  ;;  %v349_v50 = vld [vmem:[#allocation2 + $0x4c0] sm:$0xff]  ;;  %v343_v51 = vld [vmem:[#allocation2 + $0x490] sm:$0xff]  ;;  %v965_v52 = vpack.c.bf16 %v352_v45, %v344_v44  ;;  %v358_v54 = vld [vmem:[#allocation2 + $0x508] sm:$0xff] }
  0x47   : > { %954 = vmatprep.subr.bf16.mxu1 %v953_v16  ;;  %v351_v53 = vld [vmem:[#allocation2 + $0x4d0] sm:$0xff]  ;;  %v366_v55 = vld [vmem:[#allocation2 + $0x548] sm:$0xff]  ;;  %v360_v56 = vld [vmem:[#allocation2 + $0x518] sm:$0xff]  ;;  %v903_v58 = vpack.c.bf16 %v349_v50, %v341_v49 }
  0x48   : > { %v368_v57 = vld [vmem:[#allocation2 + $0x558] sm:$0xff]  ;;  %v967_v59 = vpack.c.bf16 %v351_v53, %v343_v51  ;;  %v905_v60 = vpack.c.bf16 %v366_v55, %v358_v54  ;;  %v357_v61 = vld [vmem:[#allocation2 + $0x500] sm:$0xff]  ;;  %v359_v63 = vld [vmem:[#allocation2 + $0x510] sm:$0xff] }
  0x49   : > { %892 = vmatpush1.bf16.msra.mxu0 %v891_v22  ;;  %v365_v62 = vld [vmem:[#allocation2 + $0x540] sm:$0xff]  ;;  %v969_v0 = vpack.c.bf16 %v368_v57, %v360_v56  ;;  %v367_v1 = vld [vmem:[#allocation2 + $0x550] sm:$0xff]  ;;  %v374_v2 = vld [vmem:[#allocation2 + $0x588] sm:$0xff] }
  0x4a   : > { %956 = vmatpush1.bf16.msra.mxu1 %v955_v23  ;;  %894 = vmatprep.subr.bf16.mxu0 %v893_v24  ;;  %v382_v3 = vld [vmem:[#allocation2 + $0x5c8] sm:$0xff]  ;;  %v376_v4 = vld [vmem:[#allocation2 + $0x598] sm:$0xff]  ;;  %v907_v6 = vpack.c.bf16 %v365_v62, %v357_v61  ;;  %v373_v7 = vld [vmem:[#allocation2 + $0x580] sm:$0xff]  ;;  %v971_v8 = vpack.c.bf16 %v367_v1, %v359_v63 }
  0x4b   : > { %958 = vmatprep.subr.bf16.mxu1 %v957_v28  ;;  %v384_v5 = vld [vmem:[#allocation2 + $0x5d8] sm:$0xff]  ;;  %v909_v9 = vpack.c.bf16 %v382_v3, %v374_v2  ;;  %v381_v10 = vld [vmem:[#allocation2 + $0x5c0] sm:$0xff]  ;;  %v375_v11 = vld [vmem:[#allocation2 + $0x590] sm:$0xff] }
  0x4c   : > { %v383_v12 = vld [vmem:[#allocation2 + $0x5d0] sm:$0xff]  ;;  %v973_v13 = vpack.c.bf16 %v384_v5, %v376_v4  ;;  %v390_v14 = vld [vmem:[#allocation2 + $0x608] sm:$0xff]  ;;  %v392_v17 = vld [vmem:[#allocation2 + $0x618] sm:$0xff]  ;;  %v911_v19 = vpack.c.bf16 %v381_v10, %v373_v7 }
  0x4d   : > { %896 = vmatpush1.bf16.msra.mxu0 %v895_v34  ;;  %v398_v15 = vld [vmem:[#allocation2 + $0x648] sm:$0xff]  ;;  %v400_v18 = vld [vmem:[#allocation2 + $0x658] sm:$0xff]  ;;  %v975_v20 = vpack.c.bf16 %v383_v12, %v375_v11  ;;  %v389_v22 = vld [vmem:[#allocation2 + $0x600] sm:$0xff] }
  0x4e   : > { %960 = vmatpush1.bf16.msra.mxu1 %v959_v35  ;;  %898 = vmatprep.subr.bf16.mxu0 %v897_v36  ;;  %v1304_v16 = vld [vmem:[%s1301_s6 + $0x8] sm:$0xff]  ;;  %v913_v21 = vpack.c.bf16 %v398_v15, %v390_v14  ;;  %v397_v23 = vld [vmem:[#allocation2 + $0x640] sm:$0xff]  ;;  %v391_v24 = vld [vmem:[#allocation2 + $0x610] sm:$0xff]  ;;  %v977_v25 = vpack.c.bf16 %v400_v18, %v392_v17 }
  0x4f   : > { %962 = vmatprep.subr.bf16.mxu1 %v961_v40  ;;  %517 = vmatprep.mubr.f32.mxu0 %v1304_v16  ;;  %v399_v26 = vld [vmem:[#allocation2 + $0x650] sm:$0xff]  ;;  %v406_v27 = vld [vmem:[#allocation2 + $0x688] sm:$0xff]  ;;  %v408_v29 = vld [vmem:[#allocation2 + $0x698] sm:$0xff]  ;;  %v915_v31 = vpack.c.bf16 %v397_v23, %v389_v22 }
  0x50   : > { %588 = vmatprep.mubr.f32.mxu1 %v1304_v16  ;;  %v414_v28 = vld [vmem:[#allocation2 + $0x6c8] sm:$0xff]  ;;  %v416_v30 = vld [vmem:[#allocation2 + $0x6d8] sm:$0xff]  ;;  %v979_v32 = vpack.c.bf16 %v399_v26, %v391_v24  ;;  %v405_v34 = vld [vmem:[#allocation2 + $0x680] sm:$0xff] }
  0x51   : > { %900 = vmatpush1.bf16.msra.mxu0 %v899_v46  ;;  %v917_v33 = vpack.c.bf16 %v414_v28, %v406_v27  ;;  %v413_v35 = vld [vmem:[#allocation2 + $0x6c0] sm:$0xff]  ;;  %v407_v36 = vld [vmem:[#allocation2 + $0x690] sm:$0xff]  ;;  %v981_v37 = vpack.c.bf16 %v416_v30, %v408_v29  ;;  %v422_v39 = vld [vmem:[#allocation2 + $0x708] sm:$0xff] }
  0x52   : > { %964 = vmatpush1.bf16.msra.mxu1 %v963_v47  ;;  %902 = vmatprep.subr.bf16.mxu0 %v901_v48  ;;  %v415_v38 = vld [vmem:[#allocation2 + $0x6d0] sm:$0xff]  ;;  %v430_v40 = vld [vmem:[#allocation2 + $0x748] sm:$0xff]  ;;  %v424_v41 = vld [vmem:[#allocation2 + $0x718] sm:$0xff]  ;;  %v919_v43 = vpack.c.bf16 %v413_v35, %v405_v34 }
  0x53   : > { %966 = vmatprep.subr.bf16.mxu1 %v965_v52  ;;  %v432_v42 = vld [vmem:[#allocation2 + $0x758] sm:$0xff]  ;;  %v983_v44 = vpack.c.bf16 %v415_v38, %v407_v36  ;;  %v921_v45 = vpack.c.bf16 %v430_v40, %v422_v39  ;;  %v421_v46 = vld [vmem:[#allocation2 + $0x700] sm:$0xff]  ;;  %v423_v48 = vld [vmem:[#allocation2 + $0x710] sm:$0xff] }
  0x54   : > { %v429_v47 = vld [vmem:[#allocation2 + $0x740] sm:$0xff]  ;;  %v985_v49 = vpack.c.bf16 %v432_v42, %v424_v41  ;;  %v431_v50 = vld [vmem:[#allocation2 + $0x750] sm:$0xff]  ;;  %v438_v51 = vld [vmem:[#allocation2 + $0x788] sm:$0xff] }
  0x55   : > { %904 = vmatpush1.bf16.msra.mxu0 %v903_v58  ;;  %v446_v52 = vld [vmem:[#allocation2 + $0x7c8] sm:$0xff]  ;;  %v440_v53 = vld [vmem:[#allocation2 + $0x798] sm:$0xff]  ;;  %v923_v55 = vpack.c.bf16 %v429_v47, %v421_v46  ;;  %v987_v56 = vpack.c.bf16 %v431_v50, %v423_v48  ;;  %v437_v58 = vld [vmem:[#allocation2 + $0x780] sm:$0xff] }
  0x56   : > { %968 = vmatpush1.bf16.msra.mxu1 %v967_v59  ;;  %906 = vmatprep.subr.bf16.mxu0 %v905_v60  ;;  %v448_v54 = vld [vmem:[#allocation2 + $0x7d8] sm:$0xff]  ;;  %v925_v57 = vpack.c.bf16 %v446_v52, %v438_v51  ;;  %v445_v59 = vld [vmem:[#allocation2 + $0x7c0] sm:$0xff]  ;;  %v439_v60 = vld [vmem:[#allocation2 + $0x790] sm:$0xff] }
  0x57   : > { %970 = vmatprep.subr.bf16.mxu1 %v969_v0  ;;  %v989_v61 = vpack.c.bf16 %v448_v54, %v440_v53  ;;  %v447_v62 = vld [vmem:[#allocation2 + $0x7d0] sm:$0xff]  ;;  %v202_v63 = vld [vmem:[#allocation2 + $0x28] sm:$0xff]  ;;  %v204_v1 = vld [vmem:[#allocation2 + $0x38] sm:$0xff]  ;;  %v927_v3 = vpack.c.bf16 %v445_v59, %v437_v58 }
  0x58   : > { %v210_v0 = vld [vmem:[#allocation2 + $0x68] sm:$0xff]  ;;  %v212_v2 = vld [vmem:[#allocation2 + $0x78] sm:$0xff]  ;;  %v991_v4 = vpack.c.bf16 %v447_v62, %v439_v60  ;;  %v209_v7 = vld [vmem:[#allocation2 + $0x60] sm:$0xff] }
  0x59   : > { %908 = vmatpush1.bf16.msra.mxu0 %v907_v6  ;;  %v993_v5 = vpack.c.bf16 %v210_v0, %v202_v63  ;;  %v201_v6 = vld [vmem:[#allocation2 + $0x20] sm:$0xff]  ;;  %v211_v10 = vld [vmem:[#allocation2 + $0x70] sm:$0xff]  ;;  %v218_v11 = vld [vmem:[#allocation2 + $0xa8] sm:$0xff] }
  0x5a   : > { %972 = vmatpush1.bf16.msra.mxu1 %v971_v8  ;;  %910 = vmatprep.subr.bf16.mxu0 %v909_v9  ;;  %v203_v8 = vld [vmem:[#allocation2 + $0x30] sm:$0xff]  ;;  %v1057_v9 = vpack.c.bf16 %v212_v2, %v204_v1  ;;  %v226_v12 = vld [vmem:[#allocation2 + $0xe8] sm:$0xff]  ;;  %v228_v14 = vld [vmem:[#allocation2 + $0xf8] sm:$0xff]  ;;  %v995_v17 = vpack.c.bf16 %v209_v7, %v201_v6 }
  0x5b   : > { %974 = vmatprep.subr.bf16.mxu1 %v973_v13  ;;  %v220_v13 = vld [vmem:[#allocation2 + $0xb8] sm:$0xff]  ;;  %v1309_v15 = vld [vmem:[%s1301_s6] sm:$0xff]  ;;  %v1059_v18 = vpack.c.bf16 %v211_v10, %v203_v8  ;;  %v219_v22 = vld [vmem:[#allocation2 + $0xb0] sm:$0xff] }
  0x5c   : > { %v1061_v23 = vpack.c.bf16 %v228_v14, %v220_v13  ;;  %v227_v24 = vld [vmem:[#allocation2 + $0xf0] sm:$0xff]  ;;  %v242_v26 = vld [vmem:[#allocation2 + $0x168] sm:$0xff]  ;;  %v236_v27 = vld [vmem:[#allocation2 + $0x138] sm:$0xff] }
  0x5d   : > { %912 = vmatpush1.bf16.msra.mxu0 %v911_v19  ;;  %v997_v19 = vpack.c.bf16 %v226_v12, %v218_v11  ;;  %v244_v28 = vld [vmem:[#allocation2 + $0x178] sm:$0xff]  ;;  %v1063_v30 = vpack.c.bf16 %v227_v24, %v219_v22  ;;  %v235_v34 = vld [vmem:[#allocation2 + $0x130] sm:$0xff]  ;;  %v258_v38 = vld [vmem:[#allocation2 + $0x1e8] sm:$0xff] }
  0x5e   : > { %976 = vmatpush1.bf16.msra.mxu1 %v975_v20  ;;  %914 = vmatprep.subr.bf16.mxu0 %v913_v21  ;;  %v217_v20 = vld [vmem:[#allocation2 + $0xa0] sm:$0xff]  ;;  %v1065_v35 = vpack.c.bf16 %v244_v28, %v236_v27  ;;  %v243_v36 = vld [vmem:[#allocation2 + $0x170] sm:$0xff]  ;;  %v252_v39 = vld [vmem:[#allocation2 + $0x1b8] sm:$0xff] }
  0x5f   : > { %978 = vmatprep.subr.bf16.mxu1 %v977_v25  ;;  %v225_v21 = vld [vmem:[#allocation2 + $0xe0] sm:$0xff]  ;;  %v234_v25 = vld [vmem:[#allocation2 + $0x128] sm:$0xff]  ;;  %v260_v40 = vld [vmem:[#allocation2 + $0x1f8] sm:$0xff]  ;;  %v1067_v42 = vpack.c.bf16 %v243_v36, %v235_v34 }
  0x60   : > { %v999_v29 = vpack.c.bf16 %v225_v21, %v217_v20  ;;  %v251_v46 = vld [vmem:[#allocation2 + $0x1b0] sm:$0xff]  ;;  %v1069_v47 = vpack.c.bf16 %v260_v40, %v252_v39  ;;  %v274_v50 = vld [vmem:[#allocation2 + $0x268] sm:$0xff]  ;;  %v268_v51 = vld [vmem:[#allocation2 + $0x238] sm:$0xff] }
  0x61   : > { %916 = vmatpush1.bf16.msra.mxu0 %v915_v31  ;;  %v1001_v31 = vpack.c.bf16 %v242_v26, %v234_v25  ;;  %v259_v48 = vld [vmem:[#allocation2 + $0x1f0] sm:$0xff]  ;;  %v276_v52 = vld [vmem:[#allocation2 + $0x278] sm:$0xff]  ;;  %v282_v60 = vld [vmem:[#allocation2 + $0x2a8] sm:$0xff] }
  0x62   : > { %980 = vmatpush1.bf16.msra.mxu1 %v979_v32  ;;  %918 = vmatprep.subr.bf16.mxu0 %v917_v33  ;;  %v233_v32 = vld [vmem:[#allocation2 + $0x120] sm:$0xff]  ;;  %v1073_v58 = vpack.c.bf16 %v276_v52, %v268_v51  ;;  %v275_v59 = vld [vmem:[#allocation2 + $0x270] sm:$0xff]  ;;  %v284_v62 = vld [vmem:[#allocation2 + $0x2b8] sm:$0xff] }
  0x63   : > { %982 = vmatprep.subr.bf16.mxu1 %v981_v37  ;;  %v241_v33 = vld [vmem:[#allocation2 + $0x160] sm:$0xff]  ;;  %v250_v37 = vld [vmem:[#allocation2 + $0x1a8] sm:$0xff]  ;;  %v292_v63 = vld [vmem:[#allocation2 + $0x2f8] sm:$0xff] }
  0x64   : > { %v1003_v41 = vpack.c.bf16 %v241_v33, %v233_v32  ;;  %v1077_v6 = vpack.c.bf16 %v292_v63, %v284_v62  ;;  %v291_v7 = vld [vmem:[#allocation2 + $0x2f0] sm:$0xff]  ;;  %v298_v8 = vld [vmem:[#allocation2 + $0x328] sm:$0xff]  ;;  %v300_v10 = vld [vmem:[#allocation2 + $0x338] sm:$0xff] }
  0x65   : > { %920 = vmatpush1.bf16.msra.mxu0 %v919_v43  ;;  %v1005_v43 = vpack.c.bf16 %v258_v38, %v250_v37  ;;  %v308_v11 = vld [vmem:[#allocation2 + $0x378] sm:$0xff]  ;;  %v307_v21 = vld [vmem:[#allocation2 + $0x370] sm:$0xff]  ;;  %v314_v22 = vld [vmem:[#allocation2 + $0x3a8] sm:$0xff] }
  0x66   : > { %984 = vmatpush1.bf16.msra.mxu1 %v983_v44  ;;  %922 = vmatprep.subr.bf16.mxu0 %v921_v45  ;;  %v249_v44 = vld [vmem:[#allocation2 + $0x1a0] sm:$0xff]  ;;  %v1081_v20 = vpack.c.bf16 %v308_v11, %v300_v10  ;;  %v316_v24 = vld [vmem:[#allocation2 + $0x3b8] sm:$0xff]  ;;  %v323_v33 = vld [vmem:[#allocation2 + $0x3f0] sm:$0xff] }
  0x67   : > { %986 = vmatprep.subr.bf16.mxu1 %v985_v49  ;;  %v257_v45 = vld [vmem:[#allocation2 + $0x1e0] sm:$0xff]  ;;  %v266_v49 = vld [vmem:[#allocation2 + $0x228] sm:$0xff]  ;;  %v324_v25 = vld [vmem:[#allocation2 + $0x3f8] sm:$0xff] }
  0x68   : > { %v1007_v53 = vpack.c.bf16 %v257_v45, %v249_v44  ;;  %v1009_v54 = vpack.c.bf16 %v274_v50, %v266_v49  ;;  %v1085_v32 = vpack.c.bf16 %v324_v25, %v316_v24  ;;  %v330_v34 = vld [vmem:[#allocation2 + $0x428] sm:$0xff]  ;;  %v332_v36 = vld [vmem:[#allocation2 + $0x438] sm:$0xff]  ;;  %v339_v45 = vld [vmem:[#allocation2 + $0x470] sm:$0xff] }
  0x69   : > { %924 = vmatpush1.bf16.msra.mxu0 %v923_v55  ;;  %v265_v55 = vld [vmem:[#allocation2 + $0x220] sm:$0xff]  ;;  %v340_v37 = vld [vmem:[#allocation2 + $0x478] sm:$0xff] }
  0x6a   : > { %988 = vmatpush1.bf16.msra.mxu1 %v987_v56  ;;  %926 = vmatprep.subr.bf16.mxu0 %v925_v57  ;;  %v273_v56 = vld [vmem:[#allocation2 + $0x260] sm:$0xff]  ;;  %v267_v57 = vld [vmem:[#allocation2 + $0x230] sm:$0xff]  ;;  %v1089_v44 = vpack.c.bf16 %v340_v37, %v332_v36  ;;  %v356_v49 = vld [vmem:[#allocation2 + $0x4f8] sm:$0xff] }
  0x6b   : > { %990 = vmatprep.subr.bf16.mxu1 %v989_v61  ;;  %v290_v61 = vld [vmem:[#allocation2 + $0x2e8] sm:$0xff]  ;;  %v1011_v0 = vpack.c.bf16 %v273_v56, %v265_v55  ;;  %v1075_v1 = vpack.c.bf16 %v275_v59, %v267_v57  ;;  %v355_v56 = vld [vmem:[#allocation2 + $0x4f0] sm:$0xff]  ;;  %v364_v59 = vld [vmem:[#allocation2 + $0x538] sm:$0xff] }
  0x6c   : > { %v1013_v2 = vpack.c.bf16 %v290_v61, %v282_v60  ;;  %v362_v57 = vld [vmem:[#allocation2 + $0x528] sm:$0xff]  ;;  %v372_v60 = vld [vmem:[#allocation2 + $0x578] sm:$0xff] }
  0x6d   : > { %928 = vmatpush1.bf16.msra.mxu0 %v927_v3  ;;  %v281_v3 = vld [vmem:[#allocation2 + $0x2a0] sm:$0xff] }
  0x6e   : > { %992 = vmatpush1.bf16.msra.mxu1 %v991_v4  ;;  %994 = vmatprep.subr.bf16.mxu0 %v993_v5  ;;  %v289_v4 = vld [vmem:[#allocation2 + $0x2e0] sm:$0xff]  ;;  %v283_v5 = vld [vmem:[#allocation2 + $0x2b0] sm:$0xff] }
  0x6f   : > { %1058 = vmatprep.subr.bf16.mxu1 %v1057_v9  ;;  %v306_v9 = vld [vmem:[#allocation2 + $0x368] sm:$0xff]  ;;  %v1015_v12 = vpack.c.bf16 %v289_v4, %v281_v3  ;;  %v1079_v13 = vpack.c.bf16 %v291_v7, %v283_v5  ;;  %v1097_v3 = vpack.c.bf16 %v372_v60, %v364_v59  ;;  %v371_v4 = vld [vmem:[#allocation2 + $0x570] sm:$0xff]  ;;  %v380_v7 = vld [vmem:[#allocation2 + $0x5b8] sm:$0xff] }
  0x70   : > { %518 = vmatmul.mubr.f32.vlgmr.msra.gmra.mrb[0].mxu0 %v1309_v15  ;;  %v1017_v14 = vpack.c.bf16 %v306_v9, %v298_v8  ;;  %v378_v5 = vld [vmem:[#allocation2 + $0x5a8] sm:$0xff]  ;;  %v388_v8 = vld [vmem:[#allocation2 + $0x5f8] sm:$0xff] }
  0x71   : > { %589 = vmatmul.mubr.f32.vlgmr.msra.gmra.mrb[0].mxu1 %v1309_v15  ;;  %996 = vmatpush1.bf16.msra.mxu0 %v995_v17  ;;  %v297_v17 = vld [vmem:[#allocation2 + $0x320] sm:$0xff] }
  0x72   : > { %1060 = vmatpush1.bf16.msra.mxu1 %v1059_v18  ;;  %998 = vmatprep.subr.bf16.mxu0 %v997_v19  ;;  %v305_v18 = vld [vmem:[#allocation2 + $0x360] sm:$0xff]  ;;  %v299_v19 = vld [vmem:[#allocation2 + $0x330] sm:$0xff] }
  0x73   : > { %1062 = vmatprep.subr.bf16.mxu1 %v1061_v23  ;;  %659 = vmatprep.mubr.f32.mxu0 %v1304_v16  ;;  %v322_v23 = vld [vmem:[#allocation2 + $0x3e8] sm:$0xff]  ;;  %v1019_v26 = vpack.c.bf16 %v305_v18, %v297_v17  ;;  %v1083_v27 = vpack.c.bf16 %v307_v21, %v299_v19  ;;  %v1101_v17 = vpack.c.bf16 %v388_v8, %v380_v7  ;;  %v387_v18 = vld [vmem:[#allocation2 + $0x5f0] sm:$0xff]  ;;  %v396_v21 = vld [vmem:[#allocation2 + $0x638] sm:$0xff] }
  0x74   : > { %730 = vmatprep.mubr.f32.mxu1 %v1304_v16  ;;  %v1071_v16 = vpack.c.bf16 %v259_v48, %v251_v46  ;;  %v1021_v28 = vpack.c.bf16 %v322_v23, %v314_v22  ;;  %v346_v46 = vld [vmem:[#allocation2 + $0x4a8] sm:$0xff]  ;;  %v348_v48 = vld [vmem:[#allocation2 + $0x4b8] sm:$0xff] }
  0x75   : > { %1000 = vmatpush1.bf16.msra.mxu0 %v999_v29  ;;  %v313_v29 = vld [vmem:[#allocation2 + $0x3a0] sm:$0xff]  ;;  %v1093_v55 = vpack.c.bf16 %v356_v49, %v348_v48  ;;  %v394_v19 = vld [vmem:[#allocation2 + $0x628] sm:$0xff]  ;;  %v404_v22 = vld [vmem:[#allocation2 + $0x678] sm:$0xff] }
  0x76   : > { %1064 = vmatpush1.bf16.msra.mxu1 %v1063_v30  ;;  %1002 = vmatprep.subr.bf16.mxu0 %v1001_v31  ;;  %v321_v30 = vld [vmem:[#allocation2 + $0x3e0] sm:$0xff]  ;;  %v315_v31 = vld [vmem:[#allocation2 + $0x3b0] sm:$0xff] }
  0x77   : > { %1066 = vmatprep.subr.bf16.mxu1 %v1065_v35  ;;  %v338_v35 = vld [vmem:[#allocation2 + $0x468] sm:$0xff]  ;;  %v1023_v38 = vpack.c.bf16 %v321_v30, %v313_v29  ;;  %v1087_v39 = vpack.c.bf16 %v323_v33, %v315_v31  ;;  %v1105_v29 = vpack.c.bf16 %v404_v22, %v396_v21  ;;  %v403_v30 = vld [vmem:[#allocation2 + $0x670] sm:$0xff]  ;;  %v412_v33 = vld [vmem:[#allocation2 + $0x6b8] sm:$0xff] }
  0x78   : > { %v1025_v40 = vpack.c.bf16 %v338_v35, %v330_v34  ;;  %v410_v31 = vld [vmem:[#allocation2 + $0x6a8] sm:$0xff]  ;;  %v420_v34 = vld [vmem:[#allocation2 + $0x6f8] sm:$0xff] }
  0x79   : > { %1004 = vmatpush1.bf16.msra.mxu0 %v1003_v41  ;;  %v329_v41 = vld [vmem:[#allocation2 + $0x420] sm:$0xff] }
  0x7a   : > { %1068 = vmatpush1.bf16.msra.mxu1 %v1067_v42  ;;  %1006 = vmatprep.subr.bf16.mxu0 %v1005_v43  ;;  %v337_v42 = vld [vmem:[#allocation2 + $0x460] sm:$0xff]  ;;  %v331_v43 = vld [vmem:[#allocation2 + $0x430] sm:$0xff] }
  0x7b   : > { %1070 = vmatprep.subr.bf16.mxu1 %v1069_v47  ;;  %v354_v47 = vld [vmem:[#allocation2 + $0x4e8] sm:$0xff]  ;;  %v1027_v50 = vpack.c.bf16 %v337_v42, %v329_v41  ;;  %v1091_v51 = vpack.c.bf16 %v339_v45, %v331_v43  ;;  %v1109_v41 = vpack.c.bf16 %v420_v34, %v412_v33  ;;  %v419_v42 = vld [vmem:[#allocation2 + $0x6f0] sm:$0xff]  ;;  %v428_v45 = vld [vmem:[#allocation2 + $0x738] sm:$0xff] }
  0x7c   : > { %v1029_v52 = vpack.c.bf16 %v354_v47, %v346_v46  ;;  %v426_v43 = vld [vmem:[#allocation2 + $0x728] sm:$0xff]  ;;  %v436_v46 = vld [vmem:[#allocation2 + $0x778] sm:$0xff] }
  0x7d   : > { %1008 = vmatpush1.bf16.msra.mxu0 %v1007_v53  ;;  %v345_v53 = vld [vmem:[#allocation2 + $0x4a0] sm:$0xff] }
  0x7e   : > { %1072 = vmatpush1.bf16.msra.mxu1 %v1071_v16  ;;  %1010 = vmatprep.subr.bf16.mxu0 %v1009_v54  ;;  %v353_v16 = vld [vmem:[#allocation2 + $0x4e0] sm:$0xff]  ;;  %v347_v54 = vld [vmem:[#allocation2 + $0x4b0] sm:$0xff] }
  0x7f   : > { %1074 = vmatprep.subr.bf16.mxu1 %v1073_v58  ;;  %v370_v58 = vld [vmem:[#allocation2 + $0x568] sm:$0xff]  ;;  %v1031_v61 = vpack.c.bf16 %v353_v16, %v345_v53  ;;  %v1095_v62 = vpack.c.bf16 %v355_v56, %v347_v54  ;;  %v1113_v53 = vpack.c.bf16 %v436_v46, %v428_v45  ;;  %v435_v16 = vld [vmem:[#allocation2 + $0x770] sm:$0xff]  ;;  %v444_v56 = vld [vmem:[#allocation2 + $0x7b8] sm:$0xff] }
  0x80   : > { %v1033_v63 = vpack.c.bf16 %v370_v58, %v362_v57  ;;  %v442_v54 = vld [vmem:[#allocation2 + $0x7a8] sm:$0xff]  ;;  %v452_v57 = vld [vmem:[#allocation2 + $0x7f8] sm:$0xff] }
  0x81   : > { %1012 = vmatpush1.bf16.msra.mxu0 %v1011_v0  ;;  %v361_v0 = vld [vmem:[#allocation2 + $0x520] sm:$0xff] }
  0x82   : > { %1076 = vmatpush1.bf16.msra.mxu1 %v1075_v1  ;;  %1014 = vmatprep.subr.bf16.mxu0 %v1013_v2  ;;  %v369_v1 = vld [vmem:[#allocation2 + $0x560] sm:$0xff]  ;;  %v363_v2 = vld [vmem:[#allocation2 + $0x530] sm:$0xff] }
  0x83   : > { %1078 = vmatprep.subr.bf16.mxu1 %v1077_v6  ;;  %v386_v6 = vld [vmem:[#allocation2 + $0x5e8] sm:$0xff]  ;;  %v1035_v9 = vpack.c.bf16 %v369_v1, %v361_v0  ;;  %v1099_v10 = vpack.c.bf16 %v371_v4, %v363_v2  ;;  %v443_v0 = vld [vmem:[#allocation2 + $0x7b0] sm:$0xff] }
  0x84   : > { %v1037_v11 = vpack.c.bf16 %v386_v6, %v378_v5  ;;  %v451_v1 = vld [vmem:[#allocation2 + $0x7f0] sm:$0xff] }
  0x85   : > { %1016 = vmatpush1.bf16.msra.mxu0 %v1015_v12  ;;  %v377_v12 = vld [vmem:[#allocation2 + $0x5a0] sm:$0xff] }
  0x86   : > { %1080 = vmatpush1.bf16.msra.mxu1 %v1079_v13  ;;  %1018 = vmatprep.subr.bf16.mxu0 %v1017_v14  ;;  %v385_v13 = vld [vmem:[#allocation2 + $0x5e0] sm:$0xff]  ;;  %v379_v14 = vld [vmem:[#allocation2 + $0x5b0] sm:$0xff] }
  0x87   : > { %1082 = vmatprep.subr.bf16.mxu1 %v1081_v20  ;;  %v402_v20 = vld [vmem:[#allocation2 + $0x668] sm:$0xff]  ;;  %v1039_v23 = vpack.c.bf16 %v385_v13, %v377_v12  ;;  %v1103_v24 = vpack.c.bf16 %v387_v18, %v379_v14 }
  0x88   : > { %v1041_v25 = vpack.c.bf16 %v402_v20, %v394_v19 }
  0x89   : > { %1020 = vmatpush1.bf16.msra.mxu0 %v1019_v26  ;;  %v393_v26 = vld [vmem:[#allocation2 + $0x620] sm:$0xff] }
  0x8a   : > { %1084 = vmatpush1.bf16.msra.mxu1 %v1083_v27  ;;  %1022 = vmatprep.subr.bf16.mxu0 %v1021_v28  ;;  %v401_v27 = vld [vmem:[#allocation2 + $0x660] sm:$0xff]  ;;  %v395_v28 = vld [vmem:[#allocation2 + $0x630] sm:$0xff] }
  0x8b   : > { %1086 = vmatprep.subr.bf16.mxu1 %v1085_v32  ;;  %v418_v32 = vld [vmem:[#allocation2 + $0x6e8] sm:$0xff]  ;;  %v1043_v35 = vpack.c.bf16 %v401_v27, %v393_v26  ;;  %v1107_v36 = vpack.c.bf16 %v403_v30, %v395_v28 }
  0x8c   : > { %v1045_v37 = vpack.c.bf16 %v418_v32, %v410_v31 }
  0x8d   : > { %1024 = vmatpush1.bf16.msra.mxu0 %v1023_v38  ;;  %v409_v38 = vld [vmem:[#allocation2 + $0x6a0] sm:$0xff] }
  0x8e   : > { %1088 = vmatpush1.bf16.msra.mxu1 %v1087_v39  ;;  %1026 = vmatprep.subr.bf16.mxu0 %v1025_v40  ;;  %v417_v39 = vld [vmem:[#allocation2 + $0x6e0] sm:$0xff]  ;;  %v411_v40 = vld [vmem:[#allocation2 + $0x6b0] sm:$0xff] }
  0x8f   : > { %1090 = vmatprep.subr.bf16.mxu1 %v1089_v44  ;;  %v434_v44 = vld [vmem:[#allocation2 + $0x768] sm:$0xff]  ;;  %v1047_v47 = vpack.c.bf16 %v417_v39, %v409_v38  ;;  %v1111_v48 = vpack.c.bf16 %v419_v42, %v411_v40 }
  0x90   : > { %v1049_v49 = vpack.c.bf16 %v434_v44, %v426_v43 }
  0x91   : > { %1028 = vmatpush1.bf16.msra.mxu0 %v1027_v50  ;;  %v425_v50 = vld [vmem:[#allocation2 + $0x720] sm:$0xff] }
  0x92   : > { %1092 = vmatpush1.bf16.msra.mxu1 %v1091_v51  ;;  %1030 = vmatprep.subr.bf16.mxu0 %v1029_v52  ;;  %v433_v51 = vld [vmem:[#allocation2 + $0x760] sm:$0xff]  ;;  %v427_v52 = vld [vmem:[#allocation2 + $0x730] sm:$0xff] }
  0x93   : > { %1094 = vmatprep.subr.bf16.mxu1 %v1093_v55  ;;  %v450_v55 = vld [vmem:[#allocation2 + $0x7e8] sm:$0xff]  ;;  %v1051_v58 = vpack.c.bf16 %v433_v51, %v425_v50  ;;  %v1115_v59 = vpack.c.bf16 %v435_v16, %v427_v52 }
  0x94   : > { %v1053_v60 = vpack.c.bf16 %v450_v55, %v442_v54 }
  0x95   : > { %1032 = vmatpush1.bf16.msra.mxu0 %v1031_v61  ;;  %v441_v61 = vld [vmem:[#allocation2 + $0x7a0] sm:$0xff] }
  0x96   : > { %1096 = vmatpush1.bf16.msra.mxu1 %v1095_v62  ;;  %1034 = vmatprep.subr.bf16.mxu0 %v1033_v63  ;;  %v449_v62 = vld [vmem:[#allocation2 + $0x7e0] sm:$0xff]  ;;  %v1117_v63 = vpack.c.bf16 %v452_v57, %v444_v56 }
  0x97   : > { %1098 = vmatprep.subr.bf16.mxu1 %v1097_v3  ;;  %v1055_v2 = vpack.c.bf16 %v449_v62, %v441_v61  ;;  %v1119_v3 = vpack.c.bf16 %v451_v1, %v443_v0 }
  0x99   : > { %1036 = vmatpush1.bf16.msra.mxu0 %v1035_v9 }
  0x9a   : > { %1100 = vmatpush1.bf16.msra.mxu1 %v1099_v10  ;;  %1038 = vmatprep.subr.bf16.mxu0 %v1037_v11 }
  0x9b   : > { %1102 = vmatprep.subr.bf16.mxu1 %v1101_v17 }
  0x9d   : > { %1040 = vmatpush1.bf16.msra.mxu0 %v1039_v23 }
  0x9e   : > { %1104 = vmatpush1.bf16.msra.mxu1 %v1103_v24  ;;  %1042 = vmatprep.subr.bf16.mxu0 %v1041_v25 }
  0x9f   : > { %1106 = vmatprep.subr.bf16.mxu1 %v1105_v29 }
  0xa1   : > { %1044 = vmatpush1.bf16.msra.mxu0 %v1043_v35 }
  0xa2   : > { %1108 = vmatpush1.bf16.msra.mxu1 %v1107_v36  ;;  %1046 = vmatprep.subr.bf16.mxu0 %v1045_v37 }
  0xa3   : > { %1110 = vmatprep.subr.bf16.mxu1 %v1109_v41 }
  0xa5   : > { %1048 = vmatpush1.bf16.msra.mxu0 %v1047_v47 }
  0xa6   : > { %1112 = vmatpush1.bf16.msra.mxu1 %v1111_v48  ;;  %1050 = vmatprep.subr.bf16.mxu0 %v1049_v49 }
  0xa7   : > { %1114 = vmatprep.subr.bf16.mxu1 %v1113_v53 }
  0xa9   : > { %1052 = vmatpush1.bf16.msra.mxu0 %v1051_v58 }
  0xaa   : > { %1116 = vmatpush1.bf16.msra.mxu1 %v1115_v59  ;;  %1054 = vmatprep.subr.bf16.mxu0 %v1053_v60 }
  0xab   : > { %1118 = vmatprep.subr.bf16.mxu1 %v1117_v63 }
  0xad   : > { %1056 = vmatpush1.bf16.msra.mxu0 %v1055_v2 }
  0xae   : > { %1120 = vmatpush1.bf16.msra.mxu1 %v1119_v3 }
  0xb0   : > { %660 = vmatmul.mubr.f32.vlgmr.msra.gmra.mrb[2].mxu0 %v1309_v15 }
  0xb1   : > { %731 = vmatmul.mubr.f32.vlgmr.msra.gmra.mrb[2].mxu1 %v1309_v15 }
 0x143   : > { %v519_v4 = vpop.f32.mrb[0].mxu0 }
 0x144   : > { %737 = vst [vmem:[%s194_s14] sm:$0xff] %v519_v4  ;;  %v590_v5 = vpop.f32.mrb[0].mxu1  ;;  %v521_v6 = vpop.f32.mrb[1].mxu0 }
 0x145   : > { %739 = vst [vmem:[%s194_s14 + $0x10] sm:$0xff] %v590_v5  ;;  %738 = vst [vmem:[%s194_s14 + $0x8] sm:$0xff] %v521_v6  ;;  %v592_v7 = vpop.f32.mrb[1].mxu1 }
 0x146   : > { %740 = vst [vmem:[%s194_s14 + $0x18] sm:$0xff] %v592_v7 }
 0x183   : > { %v661_v8 = vpop.f32.mrb[2].mxu0 }
 0x184   : > { %741 = vst [vmem:[%s194_s14 + $0x20] sm:$0xff] %v661_v8  ;;  %v732_v9 = vpop.f32.mrb[2].mxu1  ;;  %v663_v10 = vpop.f32.mrb[3].mxu0 }
 0x185   : > { %743 = vst [vmem:[%s194_s14 + $0x30] sm:$0xff] %v732_v9  ;;  %742 = vst [vmem:[%s194_s14 + $0x28] sm:$0xff] %v663_v10  ;;  %v734_v15 = vpop.f32.mrb[3].mxu1 }
 0x186   : > { %744 = vst [vmem:[%s194_s14 + $0x38] sm:$0xff] %v734_v15 }
 0x187 PF: > { %s13_s11 = sadd.s32 1, %s1212_s11   ;;  %s1341_s9 = smov %s1208_s10 }
 0x188   : > { %p10_p4 = scmp.ge.s32.totalorder %s13_s11, 4   ;;  %s1342_s10 = smov %s1344_s13 }
 0x18a   :  { %12 = sbr.rel (!%p10_p4) target bundleno = 2 (0x2), region = 63 }
 0x191   :  { %774 = vsyncpa [#allocation3], 1 }
 0x192   :  { %776 = vsyncpa [#allocation3 + $0x1], 1 }

</bundles_post_ra>
